<compile_context>
chip_gen: v7x
topology: tpu7x:2x2x1
jax: 0.10.0
libtpu: 0.0.40
codegen_flags: <defaults>
</compile_context>

<pallas_src>
from functools import partial

import jax
import jax.numpy as jnp
from jax.experimental import pallas as pl
from jax.experimental.pallas import tpu as pltpu


def _lstm_kernel(x_ref, w_ih_ref, w_hh_ref, b_ref, w_lin_ref, b_lin_ref,
                 feat_ref, pred_ref, *, T):
    TB, I = x_ref.shape
    B = TB // T
    H4 = w_hh_ref.shape[1]
    H = H4 // 4

    # ---- hoisted input projection: one lane-dense matmul, kept in vregs ----
    # (T*B, I) x (I, 4H) -> (T*B, 4H); with T=8, B=8 this is 8 f32 vregs.
    xw = (jnp.dot(x_ref[...], w_ih_ref[...],
                  preferred_element_type=jnp.float32)
          + b_ref[...])

    # Loop-invariant recurrent weights, loaded once (RHS push hoisted by Mosaic).
    w_hh = w_hh_ref[...]                                   # (H, 4H)

    # ---- hoisted activation constants ---------------------------------------
    # lanes [2H, 3H) are the tanh ("g") gate; all other lanes are sigmoid via
    # sigmoid(x) = 0.5 * (tanh(x / 2) + 1).
    lane = jax.lax.broadcasted_iota(jnp.int32, (B, H4), 1)
    is_g = jnp.logical_and(lane >= 2 * H, lane < 3 * H)
    pre_scale = jnp.where(is_g, 1.0, 0.5).astype(jnp.float32)   # also post-scale
    post_bias = jnp.where(is_g, 0.0, 0.5).astype(jnp.float32)

    h = jnp.zeros((B, H), jnp.float32)
    c = jnp.zeros((B, H), jnp.float32)

    # ---- unrolled serial recurrence -----------------------------------------
    for t in range(T):
        # static, 8-sublane-aligned slice of the pre-projected gates
        xw_t = xw[t * B:(t + 1) * B, :]
        # single fused (B, H) x (H, 4H) recurrent matmul per step
        gates = xw_t + jnp.dot(h, w_hh, preferred_element_type=jnp.float32)
        # one EUP tanh over the full 128-lane gate vector; mul/add only on VPU
        act = jnp.tanh(gates * pre_scale) * pre_scale + post_bias

        i_g = act[:, 0:H]
        f_g = act[:, H:2 * H]
        g_g = act[:, 2 * H:3 * H]
        o_g = act[:, 3 * H:4 * H]

        c = f_g * c + i_g * g_g
        h = o_g * jnp.tanh(c)

    feat_ref[...] = h
    pred_ref[...] = (jnp.dot(h, w_lin_ref[...],
                             preferred_element_type=jnp.float32)
                     + b_lin_ref[...])


def lstm_model_forward(x_btI, params):
    """x_btI: (B, T, I) float32, like PyTorch batch_first input."""
    w_ih4, w_hh4, b4, w_lin, b_lin = params
    B, T, I = x_btI.shape
    H4 = w_hh4.shape[1]
    H = H4 // 4
    O = w_lin.shape[1]

    # pad batch up to a full sublane group (multiple of 8), go time-major,
    # and pre-flatten to (T*Bp, I) so the kernel needs no reshape at all.
    B_pad = max(8, ((B + 7) // 8) * 8)
    x_tbI = jnp.transpose(x_btI, (1, 0, 2))               # (T, B, I)
    if B_pad != B:
        x_tbI = jnp.pad(x_tbI, ((0, 0), (0, B_pad - B), (0, 0)))
    x_flat = x_tbI.reshape(T * B_pad, I)

    vmem = pl.BlockSpec(memory_space=pltpu.MemorySpace.VMEM)
    feats, preds = pl.pallas_call(
        partial(_lstm_kernel, T=T),
        out_shape=(jax.ShapeDtypeStruct((B_pad, H), jnp.float32),
                   jax.ShapeDtypeStruct((B_pad, O), jnp.float32)),
        in_specs=[vmem] * 6,
        out_specs=(vmem, vmem),
    )(x_flat, w_ih4, w_hh4, b4, w_lin, b_lin)
    return feats[:B], preds[:B]


def init_params(key, input_size=14, hidden_size=32, output_size=1):
    """Deterministic init mirroring PyTorch's U(-1/sqrt(H), 1/sqrt(H)),
    re-packed into the fused-gate layout used by the kernel."""
    ks = jax.random.split(key, 6)
    bound = 1.0 / jnp.sqrt(jnp.float32(hidden_size))

    # PyTorch shapes: weight_ih_l0 (4H, I), weight_hh_l0 (4H, H), biases (4H,)
    weight_ih = jax.random.uniform(ks[0], (4 * hidden_size, input_size),
                                   jnp.float32, -bound, bound)
    weight_hh = jax.random.uniform(ks[1], (4 * hidden_size, hidden_size),
                                   jnp.float32, -bound, bound)
    bias_ih = jax.random.uniform(ks[2], (4 * hidden_size,), jnp.float32, -bound, bound)
    bias_hh = jax.random.uniform(ks[3], (4 * hidden_size,), jnp.float32, -bound, bound)
    lin_w = jax.random.uniform(ks[4], (output_size, hidden_size),
                               jnp.float32, -bound, bound)
    lin_b = jax.random.uniform(ks[5], (output_size,), jnp.float32, -bound, bound)

    # Fused-gate repack: transpose keeps PyTorch gate order [i, f, g, o] along
    # the 4H output axis.
    w_ih4 = weight_ih.T                                    # (I, 4H)
    w_hh4 = weight_hh.T                                    # (H, 4H)
    b4 = (bias_ih + bias_hh).reshape(1, 4 * hidden_size)   # (1, 4H)
    w_lin = lin_w.T                                        # (H, O)
    b_lin = lin_b.reshape(1, output_size)
    return (w_ih4, w_hh4, b4, w_lin, b_lin)


def reference_forward(x_btI, params):
    """Pure-JAX reference of the PyTorch LSTMModel.forward."""
    w_ih4, w_hh4, b4, w_lin, b_lin = params
    B, T, I = x_btI.shape
    H = w_hh4.shape[0]
    h = jnp.zeros((B, H), jnp.float32)
    c = jnp.zeros((B, H), jnp.float32)
    for t in range(T):
        x_t = x_btI[:, t, :]
        gates = x_t @ w_ih4 + h @ w_hh4 + b4
        i_g = jax.nn.sigmoid(gates[:, 0:H])
        f_g = jax.nn.sigmoid(gates[:, H:2 * H])
        g_g = jnp.tanh(gates[:, 2 * H:3 * H])
        o_g = jax.nn.sigmoid(gates[:, 3 * H:4 * H])
        c = f_g * c + i_g * g_g
        h = o_g * jnp.tanh(c)
    return h, h @ w_lin + b_lin


if __name__ == "__main__":
    B, T, I, H, O = 4, 8, 14, 32, 1

    key = jax.random.PRNGKey(0)
    kx, kp = jax.random.split(key)
    x = jax.random.normal(kx, (B, T, I), jnp.float32)
    params = init_params(kp, input_size=I, hidden_size=H, output_size=O)

    feats, preds = jax.jit(lstm_model_forward)(x, params)
    jax.block_until_ready((feats, preds))

    ref_feats, ref_preds = reference_forward(x, params)
    assert feats.shape == (B, H) and preds.shape == (B, O)
    assert jnp.allclose(feats, ref_feats, rtol=1e-2, atol=1e-2)
    assert jnp.allclose(preds, ref_preds, rtol=1e-2, atol=1e-2)

    print("KERNEL_OK")
</pallas_src>

<mosaic_0001>
module attributes {stable_mosaic.version = 11 : i64} {
  func.func @_lstm_kernel(%arg0: memref<64x14xf32, #tpu.memory_space<vmem>>, %arg1: memref<14x128xf32, #tpu.memory_space<vmem>>, %arg2: memref<32x128xf32, #tpu.memory_space<vmem>>, %arg3: memref<1x128xf32, #tpu.memory_space<vmem>>, %arg4: memref<32x1xf32, #tpu.memory_space<vmem>>, %arg5: memref<1x1xf32, #tpu.memory_space<vmem>>, %arg6: memref<8x32xf32, #tpu.memory_space<vmem>>, %arg7: memref<8x1xf32, #tpu.memory_space<vmem>>) attributes {dimension_semantics = [], scalar_prefetch = 0 : i64, scratch_operands = 0 : i64, tpu.core_type = #tpu.core_type<tc>} {
    %c0 = arith.constant 0 : index
    %c0_0 = arith.constant 0 : index
    %0 = vector.load %arg0[%c0, %c0_0] : memref<64x14xf32, #tpu.memory_space<vmem>>, vector<64x14xf32>
    %c0_1 = arith.constant 0 : index
    %c0_2 = arith.constant 0 : index
    %1 = vector.load %arg1[%c0_1, %c0_2] : memref<14x128xf32, #tpu.memory_space<vmem>>, vector<14x128xf32>
    %cst = arith.constant dense<0.000000e+00> : vector<64x128xf32>
    %2 = tpu.matmul %0, %1, %cst {dimension_numbers = #tpu.dot_dimension_numbers<[1], [0], [0], [1], [0, 0, 1, 1], [], []>} : vector<64x14xf32>, vector<14x128xf32>, vector<64x128xf32> -> vector<64x128xf32>
    %c0_3 = arith.constant 0 : index
    %c0_4 = arith.constant 0 : index
    %3 = vector.load %arg3[%c0_3, %c0_4] : memref<1x128xf32, #tpu.memory_space<vmem>>, vector<1x128xf32>
    %4 = vector.broadcast %3 : vector<1x128xf32> to vector<64x128xf32>
    %5 = arith.addf %2, %4 : vector<64x128xf32>
    %c0_5 = arith.constant 0 : index
    %c0_6 = arith.constant 0 : index
    %6 = vector.load %arg2[%c0_5, %c0_6] : memref<32x128xf32, #tpu.memory_space<vmem>>, vector<32x128xf32>
    %7 = tpu.iota {dimensions = array<i32: 1>} : vector<8x128xi32>
    %c64_i32 = arith.constant 64 : i32
    %8 = vector.broadcast %c64_i32 : i32 to vector<8x128xi32>
    %9 = arith.cmpi sge, %7, %8 : vector<8x128xi32>
    %c96_i32 = arith.constant 96 : i32
    %10 = vector.broadcast %c96_i32 : i32 to vector<8x128xi32>
    %11 = arith.cmpi slt, %7, %10 : vector<8x128xi32>
    %12 = arith.andi %9, %11 : vector<8x128xi1>
    %cst_7 = arith.constant 1.000000e+00 : f32
    %cst_8 = arith.constant 5.000000e-01 : f32
    %13 = vector.broadcast %cst_7 : f32 to vector<8x128xf32>
    %14 = vector.broadcast %cst_8 : f32 to vector<8x128xf32>
    %15 = arith.select %12, %13, %14 : vector<8x128xi1>, vector<8x128xf32>
    %cst_9 = arith.constant 0.000000e+00 : f32
    %cst_10 = arith.constant 5.000000e-01 : f32
    %16 = vector.broadcast %cst_9 : f32 to vector<8x128xf32>
    %17 = vector.broadcast %cst_10 : f32 to vector<8x128xf32>
    %18 = arith.select %12, %16, %17 : vector<8x128xi1>, vector<8x128xf32>
    %cst_11 = arith.constant 0.000000e+00 : f32
    %19 = vector.broadcast %cst_11 : f32 to vector<8x32xf32>
    %cst_12 = arith.constant 0.000000e+00 : f32
    %20 = vector.broadcast %cst_12 : f32 to vector<8x32xf32>
    %21 = vector.extract_strided_slice %5 {offsets = [0, 0], sizes = [8, 128], strides = [1, 1]} : vector<64x128xf32> to vector<8x128xf32>
    %cst_13 = arith.constant dense<0.000000e+00> : vector<8x128xf32>
    %22 = tpu.matmul %19, %6, %cst_13 {dimension_numbers = #tpu.dot_dimension_numbers<[1], [0], [0], [1], [0, 0, 1, 1], [], []>} : vector<8x32xf32>, vector<32x128xf32>, vector<8x128xf32> -> vector<8x128xf32>
    %23 = arith.addf %21, %22 : vector<8x128xf32>
    %24 = arith.mulf %23, %15 : vector<8x128xf32>
    %25 = math.tanh %24 : vector<8x128xf32>
    %26 = arith.mulf %25, %15 : vector<8x128xf32>
    %27 = arith.addf %26, %18 : vector<8x128xf32>
    %28 = vector.extract_strided_slice %27 {offsets = [0, 0], sizes = [8, 32], strides = [1, 1]} : vector<8x128xf32> to vector<8x32xf32>
    %29 = vector.extract_strided_slice %27 {offsets = [0, 32], sizes = [8, 32], strides = [1, 1]} : vector<8x128xf32> to vector<8x32xf32>
    %30 = vector.extract_strided_slice %27 {offsets = [0, 64], sizes = [8, 32], strides = [1, 1]} : vector<8x128xf32> to vector<8x32xf32>
    %31 = vector.extract_strided_slice %27 {offsets = [0, 96], sizes = [8, 32], strides = [1, 1]} : vector<8x128xf32> to vector<8x32xf32>
    %32 = arith.mulf %29, %20 : vector<8x32xf32>
    %33 = arith.mulf %28, %30 : vector<8x32xf32>
    %34 = arith.addf %32, %33 : vector<8x32xf32>
    %35 = math.tanh %34 : vector<8x32xf32>
    %36 = arith.mulf %31, %35 : vector<8x32xf32>
    %37 = vector.extract_strided_slice %5 {offsets = [8, 0], sizes = [8, 128], strides = [1, 1]} : vector<64x128xf32> to vector<8x128xf32>
    %cst_14 = arith.constant dense<0.000000e+00> : vector<8x128xf32>
    %38 = tpu.matmul %36, %6, %cst_14 {dimension_numbers = #tpu.dot_dimension_numbers<[1], [0], [0], [1], [0, 0, 1, 1], [], []>} : vector<8x32xf32>, vector<32x128xf32>, vector<8x128xf32> -> vector<8x128xf32>
    %39 = arith.addf %37, %38 : vector<8x128xf32>
    %40 = arith.mulf %39, %15 : vector<8x128xf32>
    %41 = math.tanh %40 : vector<8x128xf32>
    %42 = arith.mulf %41, %15 : vector<8x128xf32>
    %43 = arith.addf %42, %18 : vector<8x128xf32>
    %44 = vector.extract_strided_slice %43 {offsets = [0, 0], sizes = [8, 32], strides = [1, 1]} : vector<8x128xf32> to vector<8x32xf32>
    %45 = vector.extract_strided_slice %43 {offsets = [0, 32], sizes = [8, 32], strides = [1, 1]} : vector<8x128xf32> to vector<8x32xf32>
    %46 = vector.extract_strided_slice %43 {offsets = [0, 64], sizes = [8, 32], strides = [1, 1]} : vector<8x128xf32> to vector<8x32xf32>
    %47 = vector.extract_strided_slice %43 {offsets = [0, 96], sizes = [8, 32], strides = [1, 1]} : vector<8x128xf32> to vector<8x32xf32>
    %48 = arith.mulf %45, %34 : vector<8x32xf32>
    %49 = arith.mulf %44, %46 : vector<8x32xf32>
    %50 = arith.addf %48, %49 : vector<8x32xf32>
    %51 = math.tanh %50 : vector<8x32xf32>
    %52 = arith.mulf %47, %51 : vector<8x32xf32>
    %53 = vector.extract_strided_slice %5 {offsets = [16, 0], sizes = [8, 128], strides = [1, 1]} : vector<64x128xf32> to vector<8x128xf32>
    %cst_15 = arith.constant dense<0.000000e+00> : vector<8x128xf32>
    %54 = tpu.matmul %52, %6, %cst_15 {dimension_numbers = #tpu.dot_dimension_numbers<[1], [0], [0], [1], [0, 0, 1, 1], [], []>} : vector<8x32xf32>, vector<32x128xf32>, vector<8x128xf32> -> vector<8x128xf32>
    %55 = arith.addf %53, %54 : vector<8x128xf32>
    %56 = arith.mulf %55, %15 : vector<8x128xf32>
    %57 = math.tanh %56 : vector<8x128xf32>
    %58 = arith.mulf %57, %15 : vector<8x128xf32>
    %59 = arith.addf %58, %18 : vector<8x128xf32>
    %60 = vector.extract_strided_slice %59 {offsets = [0, 0], sizes = [8, 32], strides = [1, 1]} : vector<8x128xf32> to vector<8x32xf32>
    %61 = vector.extract_strided_slice %59 {offsets = [0, 32], sizes = [8, 32], strides = [1, 1]} : vector<8x128xf32> to vector<8x32xf32>
    %62 = vector.extract_strided_slice %59 {offsets = [0, 64], sizes = [8, 32], strides = [1, 1]} : vector<8x128xf32> to vector<8x32xf32>
    %63 = vector.extract_strided_slice %59 {offsets = [0, 96], sizes = [8, 32], strides = [1, 1]} : vector<8x128xf32> to vector<8x32xf32>
    %64 = arith.mulf %61, %50 : vector<8x32xf32>
    %65 = arith.mulf %60, %62 : vector<8x32xf32>
    %66 = arith.addf %64, %65 : vector<8x32xf32>
    %67 = math.tanh %66 : vector<8x32xf32>
    %68 = arith.mulf %63, %67 : vector<8x32xf32>
    %69 = vector.extract_strided_slice %5 {offsets = [24, 0], sizes = [8, 128], strides = [1, 1]} : vector<64x128xf32> to vector<8x128xf32>
    %cst_16 = arith.constant dense<0.000000e+00> : vector<8x128xf32>
    %70 = tpu.matmul %68, %6, %cst_16 {dimension_numbers = #tpu.dot_dimension_numbers<[1], [0], [0], [1], [0, 0, 1, 1], [], []>} : vector<8x32xf32>, vector<32x128xf32>, vector<8x128xf32> -> vector<8x128xf32>
    %71 = arith.addf %69, %70 : vector<8x128xf32>
    %72 = arith.mulf %71, %15 : vector<8x128xf32>
    %73 = math.tanh %72 : vector<8x128xf32>
    %74 = arith.mulf %73, %15 : vector<8x128xf32>
    %75 = arith.addf %74, %18 : vector<8x128xf32>
    %76 = vector.extract_strided_slice %75 {offsets = [0, 0], sizes = [8, 32], strides = [1, 1]} : vector<8x128xf32> to vector<8x32xf32>
    %77 = vector.extract_strided_slice %75 {offsets = [0, 32], sizes = [8, 32], strides = [1, 1]} : vector<8x128xf32> to vector<8x32xf32>
    %78 = vector.extract_strided_slice %75 {offsets = [0, 64], sizes = [8, 32], strides = [1, 1]} : vector<8x128xf32> to vector<8x32xf32>
    %79 = vector.extract_strided_slice %75 {offsets = [0, 96], sizes = [8, 32], strides = [1, 1]} : vector<8x128xf32> to vector<8x32xf32>
    %80 = arith.mulf %77, %66 : vector<8x32xf32>
    %81 = arith.mulf %76, %78 : vector<8x32xf32>
    %82 = arith.addf %80, %81 : vector<8x32xf32>
    %83 = math.tanh %82 : vector<8x32xf32>
    %84 = arith.mulf %79, %83 : vector<8x32xf32>
    %85 = vector.extract_strided_slice %5 {offsets = [32, 0], sizes = [8, 128], strides = [1, 1]} : vector<64x128xf32> to vector<8x128xf32>
    %cst_17 = arith.constant dense<0.000000e+00> : vector<8x128xf32>
    %86 = tpu.matmul %84, %6, %cst_17 {dimension_numbers = #tpu.dot_dimension_numbers<[1], [0], [0], [1], [0, 0, 1, 1], [], []>} : vector<8x32xf32>, vector<32x128xf32>, vector<8x128xf32> -> vector<8x128xf32>
    %87 = arith.addf %85, %86 : vector<8x128xf32>
    %88 = arith.mulf %87, %15 : vector<8x128xf32>
    %89 = math.tanh %88 : vector<8x128xf32>
    %90 = arith.mulf %89, %15 : vector<8x128xf32>
    %91 = arith.addf %90, %18 : vector<8x128xf32>
    %92 = vector.extract_strided_slice %91 {offsets = [0, 0], sizes = [8, 32], strides = [1, 1]} : vector<8x128xf32> to vector<8x32xf32>
    %93 = vector.extract_strided_slice %91 {offsets = [0, 32], sizes = [8, 32], strides = [1, 1]} : vector<8x128xf32> to vector<8x32xf32>
    %94 = vector.extract_strided_slice %91 {offsets = [0, 64], sizes = [8, 32], strides = [1, 1]} : vector<8x128xf32> to vector<8x32xf32>
    %95 = vector.extract_strided_slice %91 {offsets = [0, 96], sizes = [8, 32], strides = [1, 1]} : vector<8x128xf32> to vector<8x32xf32>
    %96 = arith.mulf %93, %82 : vector<8x32xf32>
    %97 = arith.mulf %92, %94 : vector<8x32xf32>
    %98 = arith.addf %96, %97 : vector<8x32xf32>
    %99 = math.tanh %98 : vector<8x32xf32>
    %100 = arith.mulf %95, %99 : vector<8x32xf32>
    %101 = vector.extract_strided_slice %5 {offsets = [40, 0], sizes = [8, 128], strides = [1, 1]} : vector<64x128xf32> to vector<8x128xf32>
    %cst_18 = arith.constant dense<0.000000e+00> : vector<8x128xf32>
    %102 = tpu.matmul %100, %6, %cst_18 {dimension_numbers = #tpu.dot_dimension_numbers<[1], [0], [0], [1], [0, 0, 1, 1], [], []>} : vector<8x32xf32>, vector<32x128xf32>, vector<8x128xf32> -> vector<8x128xf32>
    %103 = arith.addf %101, %102 : vector<8x128xf32>
    %104 = arith.mulf %103, %15 : vector<8x128xf32>
    %105 = math.tanh %104 : vector<8x128xf32>
    %106 = arith.mulf %105, %15 : vector<8x128xf32>
    %107 = arith.addf %106, %18 : vector<8x128xf32>
    %108 = vector.extract_strided_slice %107 {offsets = [0, 0], sizes = [8, 32], strides = [1, 1]} : vector<8x128xf32> to vector<8x32xf32>
    %109 = vector.extract_strided_slice %107 {offsets = [0, 32], sizes = [8, 32], strides = [1, 1]} : vector<8x128xf32> to vector<8x32xf32>
    %110 = vector.extract_strided_slice %107 {offsets = [0, 64], sizes = [8, 32], strides = [1, 1]} : vector<8x128xf32> to vector<8x32xf32>
    %111 = vector.extract_strided_slice %107 {offsets = [0, 96], sizes = [8, 32], strides = [1, 1]} : vector<8x128xf32> to vector<8x32xf32>
    %112 = arith.mulf %109, %98 : vector<8x32xf32>
    %113 = arith.mulf %108, %110 : vector<8x32xf32>
    %114 = arith.addf %112, %113 : vector<8x32xf32>
    %115 = math.tanh %114 : vector<8x32xf32>
    %116 = arith.mulf %111, %115 : vector<8x32xf32>
    %117 = vector.extract_strided_slice %5 {offsets = [48, 0], sizes = [8, 128], strides = [1, 1]} : vector<64x128xf32> to vector<8x128xf32>
    %cst_19 = arith.constant dense<0.000000e+00> : vector<8x128xf32>
    %118 = tpu.matmul %116, %6, %cst_19 {dimension_numbers = #tpu.dot_dimension_numbers<[1], [0], [0], [1], [0, 0, 1, 1], [], []>} : vector<8x32xf32>, vector<32x128xf32>, vector<8x128xf32> -> vector<8x128xf32>
    %119 = arith.addf %117, %118 : vector<8x128xf32>
    %120 = arith.mulf %119, %15 : vector<8x128xf32>
    %121 = math.tanh %120 : vector<8x128xf32>
    %122 = arith.mulf %121, %15 : vector<8x128xf32>
    %123 = arith.addf %122, %18 : vector<8x128xf32>
    %124 = vector.extract_strided_slice %123 {offsets = [0, 0], sizes = [8, 32], strides = [1, 1]} : vector<8x128xf32> to vector<8x32xf32>
    %125 = vector.extract_strided_slice %123 {offsets = [0, 32], sizes = [8, 32], strides = [1, 1]} : vector<8x128xf32> to vector<8x32xf32>
    %126 = vector.extract_strided_slice %123 {offsets = [0, 64], sizes = [8, 32], strides = [1, 1]} : vector<8x128xf32> to vector<8x32xf32>
    %127 = vector.extract_strided_slice %123 {offsets = [0, 96], sizes = [8, 32], strides = [1, 1]} : vector<8x128xf32> to vector<8x32xf32>
    %128 = arith.mulf %125, %114 : vector<8x32xf32>
    %129 = arith.mulf %124, %126 : vector<8x32xf32>
    %130 = arith.addf %128, %129 : vector<8x32xf32>
    %131 = math.tanh %130 : vector<8x32xf32>
    %132 = arith.mulf %127, %131 : vector<8x32xf32>
    %133 = vector.extract_strided_slice %5 {offsets = [56, 0], sizes = [8, 128], strides = [1, 1]} : vector<64x128xf32> to vector<8x128xf32>
    %cst_20 = arith.constant dense<0.000000e+00> : vector<8x128xf32>
    %134 = tpu.matmul %132, %6, %cst_20 {dimension_numbers = #tpu.dot_dimension_numbers<[1], [0], [0], [1], [0, 0, 1, 1], [], []>} : vector<8x32xf32>, vector<32x128xf32>, vector<8x128xf32> -> vector<8x128xf32>
    %135 = arith.addf %133, %134 : vector<8x128xf32>
    %136 = arith.mulf %135, %15 : vector<8x128xf32>
    %137 = math.tanh %136 : vector<8x128xf32>
    %138 = arith.mulf %137, %15 : vector<8x128xf32>
    %139 = arith.addf %138, %18 : vector<8x128xf32>
    %140 = vector.extract_strided_slice %139 {offsets = [0, 0], sizes = [8, 32], strides = [1, 1]} : vector<8x128xf32> to vector<8x32xf32>
    %141 = vector.extract_strided_slice %139 {offsets = [0, 32], sizes = [8, 32], strides = [1, 1]} : vector<8x128xf32> to vector<8x32xf32>
    %142 = vector.extract_strided_slice %139 {offsets = [0, 64], sizes = [8, 32], strides = [1, 1]} : vector<8x128xf32> to vector<8x32xf32>
    %143 = vector.extract_strided_slice %139 {offsets = [0, 96], sizes = [8, 32], strides = [1, 1]} : vector<8x128xf32> to vector<8x32xf32>
    %144 = arith.mulf %141, %130 : vector<8x32xf32>
    %145 = arith.mulf %140, %142 : vector<8x32xf32>
    %146 = arith.addf %144, %145 : vector<8x32xf32>
    %147 = math.tanh %146 : vector<8x32xf32>
    %148 = arith.mulf %143, %147 : vector<8x32xf32>
    %c0_21 = arith.constant 0 : index
    %c0_22 = arith.constant 0 : index
    %149 = vector.load %arg6[%c0_21, %c0_22] : memref<8x32xf32, #tpu.memory_space<vmem>>, vector<8x32xf32>
    tpu.vector_store %arg6[%c0_21, %c0_22], %148 {strides = array<i32>} : memref<8x32xf32, #tpu.memory_space<vmem>>, vector<8x32xf32>,
    %c0_23 = arith.constant 0 : index
    %c0_24 = arith.constant 0 : index
    %150 = vector.load %arg4[%c0_23, %c0_24] : memref<32x1xf32, #tpu.memory_space<vmem>>, vector<32x1xf32>
    %cst_25 = arith.constant dense<0.000000e+00> : vector<8x1xf32>
    %151 = tpu.matmul %148, %150, %cst_25 {dimension_numbers = #tpu.dot_dimension_numbers<[1], [0], [0], [1], [0, 0, 1, 1], [], []>} : vector<8x32xf32>, vector<32x1xf32>, vector<8x1xf32> -> vector<8x1xf32>
    %c0_26 = arith.constant 0 : index
    %c0_27 = arith.constant 0 : index
    %152 = vector.load %arg5[%c0_26, %c0_27] : memref<1x1xf32, #tpu.memory_space<vmem>>, vector<1x1xf32>
    %153 = vector.broadcast %152 : vector<1x1xf32> to vector<8x1xf32>
    %154 = arith.addf %151, %153 : vector<8x1xf32>
    %c0_28 = arith.constant 0 : index
    %c0_29 = arith.constant 0 : index
    %155 = vector.load %arg7[%c0_28, %c0_29] : memref<8x1xf32, #tpu.memory_space<vmem>>, vector<8x1xf32>
    tpu.vector_store %arg7[%c0_28, %c0_29], %154 {strides = array<i32>} : memref<8x1xf32, #tpu.memory_space<vmem>>, vector<8x1xf32>,
    return
  }
}

</mosaic_0001>

<bundles_post_ra>
// kernel: lstm_model_forward.1
= control target key start
LH: loop header
LB: loop body
LE: loop exit
PB: predicated region body
PF: predicated region fallthrough
CT: control target
= control target key end

     0   :  { %vm69_vm0 = vcmask 1045504   ;;  %vm44_vm1 = vcmask 113664   ;;  %v1350_v0 = vmov 0.0|0.0   ;;  %vm1351_vm2 = vmmov 1   ;;  %s1356_s17 = smov 32   ;;  %s1619_s1 = inlined_call_operand.vmem [shape: f32[14,128], index: 1, kind: input, shape index: {}]   ;;  %s1620_s2 = inlined_call_operand.vmem [shape: f32[32,128], index: 2, kind: input, shape index: {}]   ;;  %s1621_s0 = inlined_call_operand.vmem [shape: f32[64,14], index: 0, kind: input, shape index: {}]   ;;  %s1622_s3 = inlined_call_operand.vmem [shape: f32[1,128], index: 3, kind: input, shape index: {}]   ;;  %s1623_s4 = inlined_call_operand.vmem [shape: f32[32,1], index: 4, kind: input, shape index: {}]   ;;  %s1624_s5 = inlined_call_operand.<no memory space> [shape: f32[1,1], index: 5, kind: input, shape index: {}]   ;;  %s1625_s6 = inlined_call_operand.vmem [shape: f32[8,32], index: 6, kind: output, shape index: {0}]   ;;  %s1626_s7 = inlined_call_operand.vmem [shape: f32[8,1], index: 7, kind: output, shape index: {1}]  }
   0x1   :  { %1257 = vmatprep.subr.bf16.mxu1 %v1350_v0  ;;  %v35_v1 = vld [vmem:[%s1619_s1] sm:$0xff]  ;;  %v36_v2 = vld [vmem:[%s1619_s1 + $0x8] sm:$0x3f]  ;;  %vm1252_vm3 = vmpackc.low %vm69_vm0, %vm1351_vm2  ;;  %vm1352_vm4 = vmmov 0   ;;  %v1353_v7 = vmov 0.0   ;;  %v182_v13 = vlaneseq  ;;  %v1354_v19 = vmov 0.5  }
   0x2   :  { %v1251_v3 = vpack.c.bf16 %v36_v2, %v35_v1  ;;  %v178_v4 = vld [vmem:[%s1620_s2] sm:$0xff]  ;;  %v179_v5 = vld [vmem:[%s1620_s2 + $0x8] sm:$0xff]  ;;  %1160 = vmatprep.mubr.msk.f32.mxu1 %vm1352_vm4, %v1353_v7  ;;  %v180_v9 = vld [vmem:[%s1620_s2 + $0x10] sm:$0xff]  ;;  %vm189_vm8 = vcmask 261120   ;;  %vm1052_vm9 = vcmask 7168  }
   0x3   :  { %v27_v6 = vld [vmem:[%s1621_s0] sm:$0xff]  ;;  %v1415_v8 = vpack.c.bf16 %v179_v5, %v178_v4  ;;  %v181_v10 = vld [vmem:[%s1620_s2 + $0x18] sm:$0xff]  ;;  %v28_v11 = vld [vmem:[%s1621_s0 + $0x8] sm:$0xff]  ;;  %v183_v14 = vand.u32 127, %v182_v13 }
   0x4   :  { %1140 = vmatprep.mubr.msk.f32.mxu0 %vm44_vm1, %v27_v6  ;;  %1253 = vmatprep.subr.msk.bf16.mxu0 %vm1252_vm3, %v1251_v3  ;;  %v1428_v12 = vpack.c.bf16 %v181_v10, %v180_v9  ;;  %v1449_v15 = vld [vmem:[%s1622_s3] ss:$0 sm:$0xff]  ;;  %s1355_s3 = smov 64   ;;  %v29_v51 = vld [vmem:[%s1621_s0 + $0x10] sm:$0xff]  ;;  %v30_v52 = vld [vmem:[%s1621_s0 + $0x18] sm:$0xff] }
   0x5   :  { %1259 = vmatpush3.bf16.msra.mxu1 %v1415_v8  ;;  %1256 = vmatpush3.bf16.msk.msra.mxu0 %vm1252_vm3, %v1251_v3  ;;  %vm184_vm5 = vcmp.ge.s32.totalorder %v183_v14, 64  ;;  %vm185_vm6 = vcmp.lt.s32.totalorder %v183_v14, 96  ;;  %v31_v53 = vld [vmem:[%s1621_s0 + $0x20] sm:$0xff]  ;;  %v32_v54 = vld [vmem:[%s1621_s0 + $0x28] sm:$0xff]  ;;  %v33_v55 = vld [vmem:[%s1621_s0 + $0x30] sm:$0xff] }
   0x6   :  { %1260 = vmatprep.subr.bf16.mxu1 %v1350_v0  ;;  %1269 = vmatprep.subr.bf16.mxu0 %v1350_v0  ;;  %vm186_vm7 = vmand %vm184_vm5, %vm185_vm6  ;;  %v34_v56 = vld [vmem:[%s1621_s0 + $0x38] sm:$0xff] }
   0x7   :  { %v1452_v20 = vsel %vm186_vm7, 1.0, %v1354_v19  ;;  %v1455_v26 = vsel %vm186_vm7, 0.0, %v1354_v19 }
   0x8   :  { %1141 = vmatmul.mubr.msk.f32.vlgmr.msra.gmra.mrb[0].mxu0 %vm44_vm1, %v28_v11 }
   0x9   :  { %1262 = vmatpush3.bf16.msra.mxu1 %v1428_v12  ;;  %1271 = vmatpush3.bf16.msra.mxu0 %v1415_v8 }
   0xa   :  { %1263 = vmatprep.subr.bf16.mxu1 %v1350_v0  ;;  %1272 = vmatprep.subr.bf16.mxu0 %v1350_v0 }
   0xb   :  { %1143 = vmatprep.mubr.msk.f32.mxu0 %vm44_vm1, %v29_v51 }
   0xc   :  { %1161 = vmatmul.mubr.f32.vlgmr.msra.gmra.mrb[0].mxu1 %v1353_v7  ;;  %1144 = vmatmul.mubr.msk.f32.gmra.mrb[2].mxu0 %vm44_vm1, %v30_v52 }
   0xd   :  { %1265 = vmatpush3.bf16.msra.mxu1 %v1415_v8  ;;  %1171 = vmatprep.mubr.msk.f32.mxu1 %vm1352_vm4, %v1353_v7 }
   0xe   :  { %1266 = vmatprep.subr.bf16.mxu1 %v1350_v0  ;;  %1274 = vmatpush3.bf16.msra.mxu0 %v1428_v12 }
   0xf   :  { %1281 = vmatprep.subr.bf16.mxu0 %v1350_v0  ;;  %1146 = vmatprep.mubr.msk.f32.mxu0 %vm44_vm1, %v31_v53 }
  0x10   :  { %1147 = vmatmul.mubr.msk.f32.gmra.mrb[4].mxu0 %vm44_vm1, %v32_v54 }
  0x11   :  { %1268 = vmatpush3.bf16.msra.mxu1 %v1428_v12  ;;  %1149 = vmatprep.mubr.msk.f32.mxu0 %vm44_vm1, %v33_v55 }
  0x12   :  { %1275 = vmatprep.subr.bf16.mxu1 %v1350_v0 }
  0x14   :  { %1150 = vmatmul.mubr.msk.f32.gmra.mrb[6].mxu0 %vm44_vm1, %v34_v56 }
  0x15   :  { %1182 = vmatprep.mubr.msk.f32.mxu0 %vm1352_vm4, %v1353_v7 }
  0xdb   :  { %v1142_v16 = vpop.f32.mrb[0].mxu0 }
  0xdc   :  { %v139_v17 = vpop.f32.mrb[1].mxu0  ;;  %v145_v38 = vadd.f32 %v1142_v16, %v1449_v15 }
  0xdd   :  { %v140_v18 = vadd.f32 %v1449_v15, %v139_v17 }
  0xdf   :  { %v259_v21 = vpop.f32.mrb[0].mxu1  ;;  %v1145_v60 = vpop.f32.mrb[2].mxu0 }
  0xe0   :  { %v263_v22 = vadd.f32 %v259_v21, %v140_v18  ;;  %v1162_v23 = vpop.f32.mrb[1].mxu1  ;;  %v149_v61 = vpop.f32.mrb[3].mxu0 }
  0xe1   :  { %v150_v4 = vadd.f32 %v1449_v15, %v149_v61 }
  0xe2   :  { %v264_v24 = vmul.f32 %v263_v22, %v1452_v20 }
  0xe3   :  { %v1504_v62 = vpop.f32.mrb[4].mxu0 }
  0xe4   :  { %1318 = vtanh.f32 %v264_v24  ;;  %v1506_v63 = vpop.f32.mrb[5].mxu0  ;;  %v165_v61 = vadd.f32 %v1504_v62, %v1449_v15 }
  0xe7   :  { %v1508_v1 = vpop.f32.mrb[6].mxu0 }
  0xe8   :  { %v1510_v2 = vpop.f32.mrb[7].mxu0 }
  0xee   :  { %v1319_v25 = vpop.eup %1318 }
  0xef   :  { %v266_v27 = vmul.f32 %v1319_v25, %v1452_v20 }
  0xf1   :  { %v267_v28 = vadd.f32 %v266_v27, %v1455_v26  ;;  %v155_v27 = vadd.f32 %v1145_v60, %v1449_v15 }
  0xf3   :  { %270 = vrot.lane.b32.xlu0 %v267_v28, %s1355_s3  ;;  %v268_v31 = vmul.f32 0.0, %v267_v28 }
 0x165   :  { %v271_v29 = vpop.permute.xlu0 %270 }
 0x166   :  { %v273_v30 = vmul.f32 %v271_v29, %v267_v28 }
 0x168   :  { %275 = vrot.lane.b32.xlu0 %v273_v30, %s1356_s17 }
 0x1da   :  { %v276_v32 = vpop.permute.xlu0 %275 }
 0x1db   :  { %v278_v33 = vadd.f32 %v276_v32, %v268_v31 }
 0x1dd   :  { %1320 = vtanh.f32 %v278_v33 }
 0x1e7   :  { %v1321_v34 = vpop.eup %1320 }
 0x1e8   :  { %281 = vrot.lane.b32.xlu1 %v1321_v34, %s1355_s3 }
 0x25a   :  { %v282_v35 = vpop.permute.xlu1 %281 }
 0x25b   :  { %v284_v36 = vmul.f32 %v282_v35, %v267_v28 }
 0x25d   :  { %286 = vrot.lane.b32.xlu1 %v284_v36, %s1356_s17 }
 0x2cf   :  { %v287_v37 = vpop.permute.xlu1 %286 }
 0x2d0   :  { %1172 = vmatmul.mubr.msk.f32.vlgmr.msra.gmra.mrb[2].mxu1 %vm189_vm8, %v287_v37 }
 0x2d1   :  { %1277 = vmatpush3.bf16.msra.mxu1 %v1415_v8  ;;  %1193 = vmatprep.mubr.msk.f32.mxu1 %vm1352_vm4, %v1353_v7 }
 0x2d2   :  { %1278 = vmatprep.subr.bf16.mxu1 %v1350_v0 }
 0x2d5   :  { %1280 = vmatpush3.bf16.msra.mxu1 %v1428_v12 }
 0x2d6   :  { %1287 = vmatprep.subr.bf16.mxu1 %v1350_v0 }
 0x3a3   :  { %v356_v39 = vpop.f32.mrb[2].mxu1 }
 0x3a4   :  { %v360_v40 = vadd.f32 %v356_v39, %v145_v38  ;;  %v1173_v41 = vpop.f32.mrb[3].mxu1 }
 0x3a6   :  { %v361_v42 = vmul.f32 %v360_v40, %v1452_v20 }
 0x3a8   :  { %1322 = vtanh.f32 %v361_v42 }
 0x3b2   :  { %v1323_v43 = vpop.eup %1322 }
 0x3b3   :  { %v363_v44 = vmul.f32 %v1323_v43, %v1452_v20 }
 0x3b5   :  { %v364_v45 = vadd.f32 %v363_v44, %v1455_v26  ;;  %v160_v44 = vadd.f32 %v1449_v15, %v1506_v63 }
 0x3b7   :  { %367 = vrot.lane.b32.xlu0 %v364_v45, %s1355_s3  ;;  %v365_v48 = vmul.f32 %v364_v45, %v278_v33 }
 0x429   :  { %v368_v46 = vpop.permute.xlu0 %367 }
 0x42a   :  { %v370_v47 = vmul.f32 %v368_v46, %v364_v45 }
 0x42c   :  { %372 = vrot.lane.b32.xlu1 %v370_v47, %s1356_s17 }
 0x49e   :  { %v373_v49 = vpop.permute.xlu1 %372 }
 0x49f   :  { %v375_v50 = vadd.f32 %v373_v49, %v365_v48 }
 0x4a1   :  { %1324 = vtanh.f32 %v375_v50 }
 0x4ab   :  { %v1325_v57 = vpop.eup %1324 }
 0x4ac   :  { %378 = vrot.lane.b32.xlu0 %v1325_v57, %s1355_s3 }
 0x51e   :  { %v379_v58 = vpop.permute.xlu0 %378 }
 0x51f   :  { %v381_v59 = vmul.f32 %v379_v58, %v364_v45 }
 0x521   :  { %383 = vrot.lane.b32.xlu1 %v381_v59, %s1356_s17 }
 0x593   :  { %v384_v3 = vpop.permute.xlu1 %383 }
 0x594   :  { %1183 = vmatmul.mubr.msk.f32.vlgmr.msra.gmra.mrb[8].mxu0 %vm189_vm8, %v384_v3 }
 0x595   :  { %1283 = vmatpush3.bf16.msra.mxu0 %v1415_v8  ;;  %1204 = vmatprep.mubr.msk.f32.mxu0 %vm1352_vm4, %v1353_v7 }
 0x596   :  { %1284 = vmatprep.subr.bf16.mxu0 %v1350_v0 }
 0x599   :  { %1286 = vmatpush3.bf16.msra.mxu0 %v1428_v12 }
 0x59a   :  { %1293 = vmatprep.subr.bf16.mxu0 %v1350_v0 }
 0x667   :  { %v453_v5 = vpop.f32.mrb[8].mxu0 }
 0x668   :  { %v457_v6 = vadd.f32 %v453_v5, %v150_v4  ;;  %v1184_v9 = vpop.f32.mrb[9].mxu0 }
 0x66a   :  { %v458_v10 = vmul.f32 %v457_v6, %v1452_v20 }
 0x66c   :  { %1326 = vtanh.f32 %v458_v10 }
 0x676   :  { %v1327_v11 = vpop.eup %1326 }
 0x677   :  { %v460_v13 = vmul.f32 %v1327_v11, %v1452_v20 }
 0x679   :  { %v461_v14 = vadd.f32 %v460_v13, %v1455_v26 }
 0x67b   :  { %464 = vrot.lane.b32.xlu0 %v461_v14, %s1355_s3  ;;  %v462_v18 = vmul.f32 %v461_v14, %v375_v50 }
 0x6ed   :  { %v465_v16 = vpop.permute.xlu0 %464 }
 0x6ee   :  { %v467_v17 = vmul.f32 %v465_v16, %v461_v14 }
 0x6f0   :  { %469 = vrot.lane.b32.xlu1 %v467_v17, %s1356_s17 }
 0x762   :  { %v470_v19 = vpop.permute.xlu1 %469 }
 0x763   :  { %v472_v21 = vadd.f32 %v470_v19, %v462_v18  ;;  %v170_v19 = vadd.f32 %v1449_v15, %v1510_v2 }
 0x765   :  { %1328 = vtanh.f32 %v472_v21 }
 0x76f   :  { %v1329_v22 = vpop.eup %1328 }
 0x770   :  { %475 = vrot.lane.b32.xlu0 %v1329_v22, %s1355_s3 }
 0x7e2   :  { %v476_v23 = vpop.permute.xlu0 %475 }
 0x7e3   :  { %v478_v24 = vmul.f32 %v476_v23, %v461_v14 }
 0x7e5   :  { %480 = vrot.lane.b32.xlu1 %v478_v24, %s1356_s17 }
 0x857   :  { %v481_v25 = vpop.permute.xlu1 %480 }
 0x858   :  { %1194 = vmatmul.mubr.msk.f32.vlgmr.msra.gmra.mrb[4].mxu1 %vm189_vm8, %v481_v25 }
 0x859   :  { %1289 = vmatpush3.bf16.msra.mxu1 %v1415_v8  ;;  %1215 = vmatprep.mubr.msk.f32.mxu1 %vm1352_vm4, %v1353_v7 }
 0x85a   :  { %1290 = vmatprep.subr.bf16.mxu1 %v1350_v0 }
 0x85d   :  { %1292 = vmatpush3.bf16.msra.mxu1 %v1428_v12 }
 0x85e   :  { %1299 = vmatprep.subr.bf16.mxu1 %v1350_v0 }
 0x92b   :  { %v550_v28 = vpop.f32.mrb[4].mxu1 }
 0x92c   :  { %v554_v29 = vadd.f32 %v550_v28, %v155_v27  ;;  %v1195_v30 = vpop.f32.mrb[5].mxu1 }
 0x92e   :  { %v555_v31 = vmul.f32 %v554_v29, %v1452_v20 }
 0x930   :  { %1330 = vtanh.f32 %v555_v31 }
 0x93a   :  { %v1331_v32 = vpop.eup %1330 }
 0x93b   :  { %v557_v33 = vmul.f32 %v1331_v32, %v1452_v20 }
 0x93d   :  { %v558_v34 = vadd.f32 %v557_v33, %v1455_v26 }
 0x93f   :  { %561 = vrot.lane.b32.xlu0 %v558_v34, %s1355_s3  ;;  %v559_v37 = vmul.f32 %v558_v34, %v472_v21 }
 0x9b1   :  { %v562_v35 = vpop.permute.xlu0 %561 }
 0x9b2   :  { %v564_v36 = vmul.f32 %v562_v35, %v558_v34 }
 0x9b4   :  { %566 = vrot.lane.b32.xlu1 %v564_v36, %s1356_s17  ;;  %v175_v36 = vadd.f32 %v1508_v1, %v1449_v15  ;;  %v969_v1 = vld [vmem:[%s1623_s4] sm:$0xff] }
 0xa26   :  { %v567_v38 = vpop.permute.xlu1 %566 }
 0xa27   :  { %v569_v39 = vadd.f32 %v567_v38, %v559_v37 }
 0xa29   :  { %1332 = vtanh.f32 %v569_v39 }
 0xa33   :  { %v1333_v40 = vpop.eup %1332 }
 0xa34   :  { %572 = vrot.lane.b32.xlu0 %v1333_v40, %s1355_s3 }
 0xaa6   :  { %v573_v41 = vpop.permute.xlu0 %572 }
 0xaa7   :  { %v575_v42 = vmul.f32 %v573_v41, %v558_v34 }
 0xaa9   :  { %577 = vrot.lane.b32.xlu1 %v575_v42, %s1356_s17 }
 0xb1b   :  { %v578_v43 = vpop.permute.xlu1 %577 }
 0xb1c   :  { %1205 = vmatmul.mubr.msk.f32.vlgmr.msra.gmra.mrb[10].mxu0 %vm189_vm8, %v578_v43 }
 0xb1d   :  { %1295 = vmatpush3.bf16.msra.mxu0 %v1415_v8  ;;  %1226 = vmatprep.mubr.msk.f32.mxu0 %vm1352_vm4, %v1353_v7 }
 0xb1e   :  { %1296 = vmatprep.subr.bf16.mxu0 %v1350_v0 }
 0xb21   :  { %1298 = vmatpush3.bf16.msra.mxu0 %v1428_v12 }
 0xb22   :  { %1305 = vmatprep.subr.bf16.mxu0 %v1350_v0 }
 0xbef   :  { %v647_v45 = vpop.f32.mrb[10].mxu0 }
 0xbf0   :  { %v651_v46 = vadd.f32 %v647_v45, %v160_v44  ;;  %v1206_v47 = vpop.f32.mrb[11].mxu0 }
 0xbf2   :  { %v652_v48 = vmul.f32 %v651_v46, %v1452_v20 }
 0xbf4   :  { %1334 = vtanh.f32 %v652_v48 }
 0xbfe   :  { %v1335_v49 = vpop.eup %1334 }
 0xbff   :  { %v654_v50 = vmul.f32 %v1335_v49, %v1452_v20  ;;  %v972_v49 = vld [vmem:[%s1623_s4 + $0x18] sm:$0xff] }
 0xc01   :  { %v655_v51 = vadd.f32 %v654_v50, %v1455_v26 }
 0xc03   :  { %658 = vrot.lane.b32.xlu0 %v655_v51, %s1355_s3  ;;  %v656_v54 = vmul.f32 %v655_v51, %v569_v39 }
 0xc75   :  { %v659_v52 = vpop.permute.xlu0 %658 }
 0xc76   :  { %v661_v53 = vmul.f32 %v659_v52, %v655_v51  ;;  %v13_v52 = vstv %s1624_s5 }
 0xc77   :  { %14 = vst [vmem:[#allocation2] sm:$0x1] %v13_v52 }
 0xc78   :  { %663 = vrot.lane.b32.xlu1 %v661_v53, %s1356_s17 }
 0xcea   :  { %v664_v55 = vpop.permute.xlu1 %663 }
 0xceb   :  { %v666_v56 = vadd.f32 %v664_v55, %v656_v54 }
 0xced   :  { %1336 = vtanh.f32 %v666_v56 }
 0xcf7   :  { %v1337_v57 = vpop.eup %1336 }
 0xcf8   :  { %669 = vrot.lane.b32.xlu0 %v1337_v57, %s1355_s3 }
 0xd6a   :  { %v670_v58 = vpop.permute.xlu0 %669 }
 0xd6b   :  { %v672_v59 = vmul.f32 %v670_v58, %v655_v51 }
 0xd6d   :  { %674 = vrot.lane.b32.xlu1 %v672_v59, %s1356_s17 }
 0xddf   :  { %v675_v60 = vpop.permute.xlu1 %674 }
 0xde0   :  { %1216 = vmatmul.mubr.msk.f32.vlgmr.msra.gmra.mrb[6].mxu1 %vm189_vm8, %v675_v60 }
 0xde1   :  { %1301 = vmatpush3.bf16.msra.mxu1 %v1415_v8  ;;  %1237 = vmatprep.mubr.msk.f32.mxu1 %vm1352_vm4, %v1353_v7 }
 0xde2   :  { %1302 = vmatprep.subr.bf16.mxu1 %v1350_v0 }
 0xde5   :  { %1304 = vmatpush3.bf16.msra.mxu1 %v1428_v12 }
 0xeb3   :  { %v744_v63 = vpop.f32.mrb[6].mxu1 }
 0xeb4   :  { %v748_v3 = vadd.f32 %v744_v63, %v165_v61  ;;  %v1217_v4 = vpop.f32.mrb[7].mxu1 }
 0xeb6   :  { %v749_v5 = vmul.f32 %v748_v3, %v1452_v20 }
 0xeb8   :  { %1338 = vtanh.f32 %v749_v5 }
 0xec2   :  { %v1339_v6 = vpop.eup %1338 }
 0xec3   :  { %v751_v9 = vmul.f32 %v1339_v6, %v1452_v20 }
 0xec5   :  { %v752_v8 = vadd.f32 %v751_v9, %v1455_v26 }
 0xec7   :  { %755 = vrot.lane.b32.xlu0 %v752_v8, %s1355_s3  ;;  %v753_v12 = vmul.f32 %v752_v8, %v666_v56 }
 0xf39   :  { %v756_v10 = vpop.permute.xlu0 %755 }
 0xf3a   :  { %v758_v11 = vmul.f32 %v756_v10, %v752_v8 }
 0xf3c   :  { %760 = vrot.lane.b32.xlu1 %v758_v11, %s1356_s17 }
 0xfae   :  { %v761_v13 = vpop.permute.xlu1 %760 }
 0xfaf   :  { %v763_v62 = vadd.f32 %v761_v13, %v753_v12 }
 0xfb1   :  { %1340 = vtanh.f32 %v763_v62 }
 0xfbb   :  { %v1341_v14 = vpop.eup %1340 }
 0xfbc   :  { %766 = vrot.lane.b32.xlu0 %v1341_v14, %s1355_s3 }
0x102e   :  { %v767_v16 = vpop.permute.xlu0 %766 }
0x102f   :  { %v769_v17 = vmul.f32 %v767_v16, %v752_v8 }
0x1031   :  { %771 = vrot.lane.b32.xlu1 %v769_v17, %s1356_s17 }
0x10a3   :  { %v772_v18 = vpop.permute.xlu1 %771 }
0x10a4   :  { %1227 = vmatmul.mubr.msk.f32.vlgmr.msra.gmra.mrb[12].mxu0 %vm189_vm8, %v772_v18 }
0x10a5   :  { %1248 = vmatprep.mubr.msk.f32.mxu0 %vm1352_vm4, %v1353_v7 }
0x1177   :  { %v841_v21 = vpop.f32.mrb[12].mxu0 }
0x1178   :  { %v845_v22 = vadd.f32 %v841_v21, %v170_v19  ;;  %v1228_v23 = vpop.f32.mrb[13].mxu0 }
0x117a   :  { %v846_v24 = vmul.f32 %v845_v22, %v1452_v20 }
0x117c   :  { %1342 = vtanh.f32 %v846_v24 }
0x1186   :  { %v1343_v25 = vpop.eup %1342 }
0x1187   :  { %v848_v27 = vmul.f32 %v1343_v25, %v1452_v20 }
0x1189   :  { %v849_v28 = vadd.f32 %v848_v27, %v1455_v26 }
0x118b   :  { %852 = vrot.lane.b32.xlu0 %v849_v28, %s1355_s3  ;;  %v850_v7 = vmul.f32 %v849_v28, %v763_v62 }
0x11fd   :  { %v853_v29 = vpop.permute.xlu0 %852 }
0x11fe   :  { %v855_v30 = vmul.f32 %v853_v29, %v849_v28 }
0x1200   :  { %857 = vrot.lane.b32.xlu1 %v855_v30, %s1356_s17 }
0x1272   :  { %v858_v31 = vpop.permute.xlu1 %857 }
0x1273   :  { %v860_v2 = vadd.f32 %v858_v31, %v850_v7 }
0x1275   :  { %1344 = vtanh.f32 %v860_v2 }
0x127f   :  { %v1345_v32 = vpop.eup %1344 }
0x1280   :  { %863 = vrot.lane.b32.xlu0 %v1345_v32, %s1355_s3 }
0x12f2   :  { %v864_v33 = vpop.permute.xlu0 %863 }
0x12f3   :  { %v866_v34 = vmul.f32 %v864_v33, %v849_v28 }
0x12f5   :  { %868 = vrot.lane.b32.xlu1 %v866_v34, %s1356_s17 }
0x1367   :  { %v869_v35 = vpop.permute.xlu1 %868 }
0x1368   :  { %1238 = vmatmul.mubr.msk.f32.vlgmr.msra.gmra.mrb[8].mxu1 %vm189_vm8, %v869_v35 }
0x143b   :  { %v938_v37 = vpop.f32.mrb[8].mxu1 }
0x143c   :  { %v942_v38 = vadd.f32 %v938_v37, %v175_v36  ;;  %v1239_v39 = vpop.f32.mrb[9].mxu1 }
0x143e   :  { %v943_v40 = vmul.f32 %v942_v38, %v1452_v20 }
0x1440   :  { %1346 = vtanh.f32 %v943_v40 }
0x144a   :  { %v1347_v41 = vpop.eup %1346 }
0x144b   :  { %v945_v42 = vmul.f32 %v1347_v41, %v1452_v20  ;;  %v970_v20 = vld [vmem:[%s1623_s4 + $0x8] sm:$0xff] }
0x144c   :  { %v1306_v48 = vpack.c.bf16 %v970_v20, %v969_v1 }
0x144d   :  { %v946_v43 = vadd.f32 %v945_v42, %v1455_v26  ;;  %v971_v26 = vld [vmem:[%s1623_s4 + $0x10] sm:$0xff] }
0x144e   :  { %1307 = vmatpush3.bf16.msra.mxu0 %v1306_v48  ;;  %v1309_v50 = vpack.c.bf16 %v972_v49, %v971_v26 }
0x144f   :  { %949 = vrot.lane.b32.xlu0 %v946_v43, %s1355_s3  ;;  %v947_v46 = vmul.f32 %v946_v43, %v860_v2  ;;  %1308 = vmatprep.subr.bf16.mxu0 %v1350_v0  ;;  %v1079_v0 = vld [vmem:[#allocation2] ss:$0 sm:$0xff] }
0x1452   :  { %1310 = vmatpush3.bf16.msra.mxu0 %v1309_v50 }
0x14c1   :  { %v950_v44 = vpop.permute.xlu0 %949 }
0x14c2   :  { %v952_v45 = vmul.f32 %v950_v44, %v946_v43 }
0x14c4   :  { %954 = vrot.lane.b32.xlu1 %v952_v45, %s1356_s17 }
0x1536   :  { %v955_v47 = vpop.permute.xlu1 %954 }
0x1537   :  { %v957_v15 = vadd.f32 %v955_v47, %v947_v46 }
0x1539   :  { %1348 = vtanh.f32 %v957_v15 }
0x1543   :  { %v1349_v51 = vpop.eup %1348 }
0x1544   :  { %960 = vrot.lane.b32.xlu0 %v1349_v51, %s1355_s3 }
0x15b6   :  { %v961_v53 = vpop.permute.xlu0 %960 }
0x15b7   :  { %v963_v54 = vmul.f32 %v961_v53, %v946_v43 }
0x15b9   :  { %965 = vrot.lane.b32.xlu1 %v963_v54, %s1356_s17 }
0x162b   :  { %v966_v55 = vpop.permute.xlu1 %965 }
0x162c   :  { %968 = vst.msk [vmem:[%s1625_s6] sm:$0xff] %vm189_vm8, %v966_v55  ;;  %1249 = vmatmul.mubr.msk.f32.vlgmr.msra.gmra.mrb[14].mxu0 %vm189_vm8, %v966_v55 }
0x16ff   :  { %v1048_v56 = vpop.f32.mrb[14].mxu0 }
0x1700   :  { %v1049_v57 = vadd.f32 %v1079_v0, %v1048_v56  ;;  %v1250_v58 = vpop.f32.mrb[15].mxu0 }
0x1702   :  { %1053 = vst.msk [vmem:[%s1626_s7] sm:$0xff] %vm1052_vm9, %v1049_v57 }

</bundles_post_ra>
